<compile_context>
chip_gen: v5e
topology: v5e:2x2
jax: 0.10.0
libtpu: 0.0.40
codegen_flags: <defaults>
</compile_context>

<pallas_src>
import functools

import jax
import jax.numpy as jnp
import numpy as np
from jax.experimental import pallas as pl
from jax.experimental.pallas import tpu as pltpu

LANES = 128  # vreg lane width; fused layer width


def _round_up(x, m):
    return (x + m - 1) // m * m


# --------------------------------- kernel ------------------------------------

def _duel_q_kernel(state_ref, w_ref, b_ref, q_ref, colsum_ref, *, sp):
    """state_ref: (TB, sp) bf16   w_ref: (sp+256, 128) bf16   b_ref: (8, 128) f32
       q_ref: (TB, 128) bf16      colsum_ref: (1, 128) f32 (resident accumulator)."""
    i = pl.program_id(0)

    @pl.when(i == 0)
    def _():
        colsum_ref[...] = jnp.zeros_like(colsum_ref)

    x = state_ref[...]                                  # (TB, sp) bf16

    # Static, tile-aligned views into the packed weight slab (zero-cost views).
    w1 = w_ref[0:sp, :]                                 # fc1
    w2 = w_ref[sp:sp + LANES, :]                        # fused fc2_val | fc2_adv
    w3 = w_ref[sp + LANES:sp + 2 * LANES, :]            # fused fc3 (val folded in)
    b1 = b_ref[0:1, :]
    b2 = b_ref[1:2, :]
    b3 = b_ref[2:3, :]

    # fc1 + relu (lanes >= fc1_units are exactly zero by construction).
    h1 = jnp.maximum(
        jnp.dot(x, w1, preferred_element_type=jnp.float32) + b1, 0.0
    ).astype(jnp.bfloat16)
    # fused fc2 + relu: lanes [0:h2] = x_val, lanes [h2:2*h2] = x_adv.
    h2 = jnp.maximum(
        jnp.dot(h1, w2, preferred_element_type=jnp.float32) + b2, 0.0
    ).astype(jnp.bfloat16)
    # fused fc3: lanes [0:act] = adv_j + val, lane act = -act*val, rest exactly 0.
    h3 = jnp.dot(h2, w3, preferred_element_type=jnp.float32) + b3    # (TB, 128) f32

    # Lane-dense unmasked bf16 store; only lanes [0:act] are meaningful.
    q_ref[...] = h3.astype(q_ref.dtype)

    # Cross-tile partial sums for the global adv.mean(): sum over all 128 lanes
    # of h3 equals sum_j adv_j per row (val cancels against the -act*val lane).
    colsum_ref[...] += jnp.sum(h3, axis=0, keepdims=True)


# -------------------------------- wrapper -------------------------------------

@functools.partial(jax.jit, static_argnames=("action_size", "tb"))
def duel_q_forward(state, wslab, bslab, action_size, tb=128):
    """state: (B, sp) bf16, pre-padded via prepare_state(). Returns (B, action_size) f32."""
    B, sp = state.shape
    assert state.dtype == jnp.bfloat16
    assert wslab.shape == (sp + 2 * LANES, LANES)
    assert B % tb == 0, "batch must be a multiple of tb (pad batch at data-prep time)"
    assert tb % 16 == 0 or tb == B, "tb must be a multiple of the bf16 sublane tile"
    nb = B // tb

    # ~2x the per-step working set (double-buffered state/out, resident weights,
    # f32 temporaries), bounded away from the scoped-VMEM default ceilings.
    step_bytes = (2 * tb * sp * 2                     # state double-buffer (bf16)
                  + 2 * tb * LANES * 2                # q output double-buffer (bf16)
                  + (sp + 2 * LANES) * LANES * 2      # resident weight slab (bf16)
                  + 8 * LANES * 4 + LANES * 4         # biases + colsum (f32)
                  + 6 * tb * LANES * 4)               # f32 h1/h2/h3 temporaries
    vmem_limit = int(min(max(2 * step_bytes, 4 << 20), 32 << 20))

    cost = pl.CostEstimate(
        flops=2 * B * LANES * (sp + 2 * LANES),
        transcendentals=0,
        bytes_accessed=(B * sp * 2 + (sp + 2 * LANES) * LANES * 2
                        + 8 * LANES * 4 + B * LANES * 2 + LANES * 4),
    )

    q_slab, colsum = pl.pallas_call(
        functools.partial(_duel_q_kernel, sp=sp),
        grid=(nb,),
        in_specs=[
            pl.BlockSpec((tb, sp), lambda i: (i, 0)),                 # state tile
            pl.BlockSpec((sp + 2 * LANES, LANES), lambda i: (0, 0)),  # weights (resident)
            pl.BlockSpec((8, LANES), lambda i: (0, 0)),               # biases (resident)
        ],
        out_specs=(
            pl.BlockSpec((tb, LANES), lambda i: (i, 0)),              # q slab tile
            pl.BlockSpec((1, LANES), lambda i: (0, 0)),               # adv per-lane sums
        ),
        out_shape=(
            jax.ShapeDtypeStruct((B, LANES), jnp.bfloat16),
            jax.ShapeDtypeStruct((1, LANES), jnp.float32),
        ),
        compiler_params=pltpu.CompilerParams(
            dimension_semantics=("arbitrary",),   # sequential: resident mean accumulator
            vmem_limit_bytes=vmem_limit,
        ),
        cost_estimate=cost,
    )(state, wslab, bslab)

    # Tiny epilogue: finalize the global mean and slice the valid action lanes.
    adv_mean = jnp.sum(colsum) * (1.0 / (B * action_size))
    return q_slab[:, :action_size].astype(jnp.float32) - adv_mean


# ----------------------------- host-side packing ------------------------------

def _linear_init(key, fan_in, fan_out):
    # PyTorch nn.Linear default: U(-1/sqrt(fan_in), 1/sqrt(fan_in)) for W and b.
    kw, kb = jax.random.split(key)
    bound = 1.0 / np.sqrt(fan_in)
    w = jax.random.uniform(kw, (fan_in, fan_out), jnp.float32, -bound, bound)
    b = jax.random.uniform(kb, (fan_out,), jnp.float32, -bound, bound)
    return w, b


def make_params(key, state_size, action_size, fc1_units=64, fc2_units=64):
    keys = jax.random.split(key, 5)
    p = {}
    p["w1"], p["b1"] = _linear_init(keys[0], state_size, fc1_units)
    p["w2v"], p["b2v"] = _linear_init(keys[1], fc1_units, fc2_units)
    p["w2a"], p["b2a"] = _linear_init(keys[2], fc1_units, fc2_units)
    p["w3v"], p["b3v"] = _linear_init(keys[3], fc2_units, 1)
    p["w3a"], p["b3a"] = _linear_init(keys[4], fc2_units, action_size)
    return p


def pack_params(p, state_size, action_size, fc1_units=64, fc2_units=64):
    """Pack all layers into one bf16 weight slab + one f32 bias slab (done once, host-side)."""
    assert fc1_units <= LANES and 2 * fc2_units <= LANES and action_size + 1 <= LANES
    sp = _round_up(state_size, 16)   # 16: bf16 packed-tile sublane alignment
    h1, h2, act = fc1_units, fc2_units, action_size

    # fc1: (sp, 128), valid block [0:state_size, 0:h1].
    w1p = jnp.zeros((sp, LANES), jnp.float32).at[:state_size, :h1].set(p["w1"])

    # fused fc2: rows = h1 input features (rest zero), cols = [val | adv].
    w2f = jnp.zeros((LANES, LANES), jnp.float32)
    w2f = w2f.at[:h1, :h2].set(p["w2v"]).at[:h1, h2:2 * h2].set(p["w2a"])

    # fused fc3, val folded into every adv lane; lane `act` packed as -act*val so
    # a plain row-sum over all lanes of h3 equals sum_j adv_j (for adv.mean()).
    w3f = jnp.zeros((LANES, LANES), jnp.float32)
    w3f = w3f.at[h2:2 * h2, :act].set(p["w3a"])
    w3f = w3f.at[:h2, :act].add(jnp.broadcast_to(p["w3v"], (h2, act)))
    w3f = w3f.at[:h2, act].set(-float(act) * p["w3v"][:, 0])

    wslab = jnp.concatenate([w1p, w2f, w3f], axis=0).astype(jnp.bfloat16)  # (sp+256, 128)

    bslab = jnp.zeros((8, LANES), jnp.float32)
    bslab = bslab.at[0, :h1].set(p["b1"])
    bslab = bslab.at[1, :h2].set(p["b2v"]).at[1, h2:2 * h2].set(p["b2a"])
    bslab = bslab.at[2, :act].set(p["b3a"] + p["b3v"][0])
    bslab = bslab.at[2, act].set(-float(act) * p["b3v"][0])
    return wslab, bslab


def prepare_state(state, state_size):
    """One-time data-prep: pad feature dim to the packed width and cast to bf16."""
    B, S = state.shape
    assert S == state_size
    sp = _round_up(state_size, 16)
    if S < sp:
        state = jnp.pad(state, ((0, 0), (0, sp - S)))
    return state.astype(jnp.bfloat16)


# -------------------------------- reference -----------------------------------

def reference_forward(state, p):
    h = jnp.maximum(state @ p["w1"] + p["b1"], 0.0)
    xv = jnp.maximum(h @ p["w2v"] + p["b2v"], 0.0)
    xa = jnp.maximum(h @ p["w2a"] + p["b2a"], 0.0)
    val = xv @ p["w3v"] + p["b3v"]
    adv = xa @ p["w3a"] + p["b3a"]
    return val + adv - jnp.mean(adv)


if __name__ == "__main__":
    B, STATE, ACTION, TB = 64, 16, 4, 32   # grid of 2 batch tiles; use TB=512 at real batch sizes
    key = jax.random.PRNGKey(0)
    k_state, k_params = jax.random.split(key, 2)

    state_f32 = jax.random.normal(k_state, (B, STATE), jnp.float32)
    params = make_params(k_params, STATE, ACTION)
    wslab, bslab = pack_params(params, STATE, ACTION)
    state = prepare_state(state_f32, STATE)   # pad + bf16 cast once, outside the forward

    out = duel_q_forward(state, wslab, bslab, action_size=ACTION, tb=TB)
    out = jax.block_until_ready(out)

    ref = reference_forward(state_f32, params)
    # bf16 weights/activations with f32 accumulation: loosened tolerance vs the f32 reference.
    np.testing.assert_allclose(np.asarray(out), np.asarray(ref), rtol=3e-2, atol=3e-2)

    print("KERNEL_OK")
</pallas_src>

<mosaic_0001>
module attributes {stable_mosaic.version = 11 : i64} {
  func.func @_duel_q_kernel(%arg0: i32, %arg1: memref<32x16xbf16, #tpu.memory_space<vmem>>, %arg2: memref<272x128xbf16, #tpu.memory_space<vmem>>, %arg3: memref<8x128xf32, #tpu.memory_space<vmem>>, %arg4: memref<32x128xbf16, #tpu.memory_space<vmem>>, %arg5: memref<1x128xf32, #tpu.memory_space<vmem>>) attributes {dimension_semantics = [#tpu.dimension_semantics<arbitrary>], iteration_bounds = array<i64: 2>, scalar_prefetch = 0 : i64, scratch_operands = 0 : i64, tpu.core_type = #tpu.core_type<tc>, window_params = [{transform_indices = @transform_0, window_bounds = array<i64: 32, 16>}, {pipeline_mode = #tpu.pipeline_mode<synchronous>, transform_indices = @transform_1, window_bounds = array<i64: 272, 128>}, {pipeline_mode = #tpu.pipeline_mode<synchronous>, transform_indices = @transform_2, window_bounds = array<i64: 8, 128>}, {transform_indices = @transform_3, window_bounds = array<i64: 32, 128>}, {pipeline_mode = #tpu.pipeline_mode<synchronous>, transform_indices = @transform_4, window_bounds = array<i64: 1, 128>}]} {
    %c0_i32 = arith.constant 0 : i32
    %0 = arith.cmpi eq, %arg0, %c0_i32 : i32
    %1 = arith.extui %0 : i1 to i32
    %c0_i32_0 = arith.constant 0 : i32
    %2 = arith.cmpi ne, %1, %c0_i32_0 : i32
    scf.if %2 {
      %cst_21 = arith.constant 0.000000e+00 : f32
      %32 = vector.broadcast %cst_21 : f32 to vector<1x128xf32>
      %c0_22 = arith.constant 0 : index
      %c0_23 = arith.constant 0 : index
      %33 = vector.load %arg5[%c0_22, %c0_23] : memref<1x128xf32, #tpu.memory_space<vmem>>, vector<1x128xf32>
      tpu.vector_store %arg5[%c0_22, %c0_23], %32 {strides = array<i32>} : memref<1x128xf32, #tpu.memory_space<vmem>>, vector<1x128xf32>,
    } else {
    }
    %c0 = arith.constant 0 : index
    %c0_1 = arith.constant 0 : index
    %3 = vector.load %arg1[%c0, %c0_1] : memref<32x16xbf16, #tpu.memory_space<vmem>>, vector<32x16xbf16>
    %c0_2 = arith.constant 0 : index
    %c0_3 = arith.constant 0 : index
    %4 = vector.load %arg2[%c0_2, %c0_3] : memref<272x128xbf16, #tpu.memory_space<vmem>>, vector<16x128xbf16>
    %c16 = arith.constant 16 : index
    %c0_4 = arith.constant 0 : index
    %5 = vector.load %arg2[%c16, %c0_4] : memref<272x128xbf16, #tpu.memory_space<vmem>>, vector<128x128xbf16>
    %c144 = arith.constant 144 : index
    %c0_5 = arith.constant 0 : index
    %6 = vector.load %arg2[%c144, %c0_5] : memref<272x128xbf16, #tpu.memory_space<vmem>>, vector<128x128xbf16>
    %c0_6 = arith.constant 0 : index
    %c0_7 = arith.constant 0 : index
    %7 = vector.load %arg3[%c0_6, %c0_7] : memref<8x128xf32, #tpu.memory_space<vmem>>, vector<1x128xf32>
    %c1 = arith.constant 1 : index
    %c0_8 = arith.constant 0 : index
    %8 = vector.load %arg3[%c1, %c0_8] : memref<8x128xf32, #tpu.memory_space<vmem>>, vector<1x128xf32>
    %c2 = arith.constant 2 : index
    %c0_9 = arith.constant 0 : index
    %9 = vector.load %arg3[%c2, %c0_9] : memref<8x128xf32, #tpu.memory_space<vmem>>, vector<1x128xf32>
    %cst = arith.constant dense<0.000000e+00> : vector<32x128xf32>
    %10 = tpu.matmul %3, %4, %cst {dimension_numbers = #tpu.dot_dimension_numbers<[1], [0], [0], [1], [0, 0, 1, 1], [], []>} : vector<32x16xbf16>, vector<16x128xbf16>, vector<32x128xf32> -> vector<32x128xf32>
    %11 = vector.broadcast %7 : vector<1x128xf32> to vector<32x128xf32>
    %12 = arith.addf %10, %11 : vector<32x128xf32>
    %cst_10 = arith.constant 0.000000e+00 : f32
    %13 = vector.broadcast %cst_10 : f32 to vector<32x128xf32>
    %14 = arith.maximumf %12, %13 : vector<32x128xf32>
    %15 = arith.truncf %14 : vector<32x128xf32> to vector<32x128xbf16>
    %cst_11 = arith.constant dense<0.000000e+00> : vector<32x128xf32>
    %16 = tpu.matmul %15, %5, %cst_11 {dimension_numbers = #tpu.dot_dimension_numbers<[1], [0], [0], [1], [0, 0, 1, 1], [], []>} : vector<32x128xbf16>, vector<128x128xbf16>, vector<32x128xf32> -> vector<32x128xf32>
    %17 = vector.broadcast %8 : vector<1x128xf32> to vector<32x128xf32>
    %18 = arith.addf %16, %17 : vector<32x128xf32>
    %cst_12 = arith.constant 0.000000e+00 : f32
    %19 = vector.broadcast %cst_12 : f32 to vector<32x128xf32>
    %20 = arith.maximumf %18, %19 : vector<32x128xf32>
    %21 = arith.truncf %20 : vector<32x128xf32> to vector<32x128xbf16>
    %cst_13 = arith.constant dense<0.000000e+00> : vector<32x128xf32>
    %22 = tpu.matmul %21, %6, %cst_13 {dimension_numbers = #tpu.dot_dimension_numbers<[1], [0], [0], [1], [0, 0, 1, 1], [], []>} : vector<32x128xbf16>, vector<128x128xbf16>, vector<32x128xf32> -> vector<32x128xf32>
    %23 = vector.broadcast %9 : vector<1x128xf32> to vector<32x128xf32>
    %24 = arith.addf %22, %23 : vector<32x128xf32>
    %25 = arith.truncf %24 : vector<32x128xf32> to vector<32x128xbf16>
    %c0_14 = arith.constant 0 : index
    %c0_15 = arith.constant 0 : index
    %26 = vector.load %arg4[%c0_14, %c0_15] : memref<32x128xbf16, #tpu.memory_space<vmem>>, vector<32x128xbf16>
    tpu.vector_store %arg4[%c0_14, %c0_15], %25 {strides = array<i32>} : memref<32x128xbf16, #tpu.memory_space<vmem>>, vector<32x128xbf16>,
    %c0_16 = arith.constant 0 : index
    %c0_17 = arith.constant 0 : index
    %27 = vector.load %arg5[%c0_16, %c0_17] : memref<1x128xf32, #tpu.memory_space<vmem>>, vector<1x128xf32>
    %cst_18 = arith.constant dense<0.000000e+00> : vector<128xf32>
    %28 = vector.multi_reduction <add>, %24, %cst_18 [0] : vector<32x128xf32> to vector<128xf32>
    %29 = vector.shape_cast %28 : vector<128xf32> to vector<1x128xf32>
    %30 = arith.addf %27, %29 : vector<1x128xf32>
    %c0_19 = arith.constant 0 : index
    %c0_20 = arith.constant 0 : index
    %31 = vector.load %arg5[%c0_19, %c0_20] : memref<1x128xf32, #tpu.memory_space<vmem>>, vector<1x128xf32>
    tpu.vector_store %arg5[%c0_19, %c0_20], %30 {strides = array<i32>} : memref<1x128xf32, #tpu.memory_space<vmem>>, vector<1x128xf32>,
    return
  }
  func.func @transform_0(%arg0: i32) -> (i32, i32) {
    %c0_i32 = arith.constant 0 : i32
    %c0_i32_0 = arith.constant 0 : i32
    return %arg0, %c0_i32 : i32, i32
  }
  func.func @transform_1(%arg0: i32) -> (i32, i32) {
    %c0_i32 = arith.constant 0 : i32
    %c0_i32_0 = arith.constant 0 : i32
    %c0_i32_1 = arith.constant 0 : i32
    return %c0_i32, %c0_i32_0 : i32, i32
  }
  func.func @transform_2(%arg0: i32) -> (i32, i32) {
    %c0_i32 = arith.constant 0 : i32
    %c0_i32_0 = arith.constant 0 : i32
    %c0_i32_1 = arith.constant 0 : i32
    return %c0_i32, %c0_i32_0 : i32, i32
  }
  func.func @transform_3(%arg0: i32) -> (i32, i32) {
    %c0_i32 = arith.constant 0 : i32
    %c0_i32_0 = arith.constant 0 : i32
    return %arg0, %c0_i32 : i32, i32
  }
  func.func @transform_4(%arg0: i32) -> (i32, i32) {
    %c0_i32 = arith.constant 0 : i32
    %c0_i32_0 = arith.constant 0 : i32
    %c0_i32_1 = arith.constant 0 : i32
    return %c0_i32, %c0_i32_0 : i32, i32
  }
}

</mosaic_0001>

<bundles_post_ra>
// kernel: duel_q_forward.1
= control target key start
LH: loop header
LB: loop body
LE: loop exit
PB: predicated region body
PF: predicated region fallthrough
CT: control target
= control target key end

     0   :  { %10 = vsyncpa [#allocation3], 0  ;;  %s782_s15 = smov 0   ;;  %s825_s0 = inlined_call_operand.vmem [shape: bf16[64,16], index: 0, kind: input, shape index: {}]   ;;  %s826_s1 = inlined_call_operand.hbm [shape: bf16[272,128], index: 1, kind: input, shape index: {}]   ;;  %s827_s2 = inlined_call_operand.vmem [shape: f32[8,128], index: 2, kind: input, shape index: {}]   ;;  %s828_s3 = inlined_call_operand.vmem [shape: bf16[64,128], index: 3, kind: output, shape index: {0}]   ;;  %s829_s4 = inlined_call_operand.vmem [shape: f32[1,128], index: 4, kind: output, shape index: {1}]  }
   0x1 LB: > { %s147_s18 = sshll.u32 %s826_s1, 4  ;;  %s548_s19 = sadd.s32 4294967295, %s751_s15   ;;  %s751_s15 = sphi %s782_s15, %s16_s15   ;;  %s148_s18 = int_to_ptr.hbm [resolvable:$true] %s147_s18 }
   0x2   : > { %p550_p0 = scmp.ge.s32.totalorder %s751_s15, 1  ;;  %p136_p1 = scmp.lt.s32.totalorder %s751_s15, 3 }
   0x3   : > { %p551_p2 = scmp.ne.s32.totalorder %s548_s19, 0  ;;  %p694_p3 = scmp.eq.s32.totalorder %s548_s19, 0 }
   0x4   : > { %p137_p4 = pnand %p550_p0, %p136_p1  ;;  %s753_s20 = smov [#allocation2]  }
   0x5   : > { %s149_s21 = sshll.u32 %s753_s20, 4  ;;  %s754_s22 = smov 64   ;;  %s150_s21 = int_to_ptr.vmem [resolvable:$true] %s149_s21 }
   0x6   : > { %p690_p5 = pneg %p137_p4  ;;  %s755_s23 = smov 4  }
   0x7   : > { %177 = sbr.rel (%p137_p4) target bundleno = 486 (0x1e6), region = 32 }
   0x8   : > { %p691_p6 = pnand %p694_p3, %p690_p5 }
   0xa   : > { %693 = dma.hbm_to_vmem [thread:$0]  (!%p691_p6), %s148_s18, 2176, %s150_s21, [#allocation3], %s754_s22, %s754_s22, %s755_s23  }
   0xc   : > { %746 = dma.done.wait (%p694_p3), [#allocation3], 2176  }
   0xd   : > { %748 = vsyncadd (%p694_p3), [#allocation3], 4294965120  ;;  %s555_s24 = sshll.u32 %s548_s19, 2 }
   0xe   : > { %p205_p7 = scmp.lt.s32.totalorder %s555_s24, 7  ;;  %220 = sbr.rel (%p551_p2) target bundleno = 21 (0x15), region = 40 }
  0x10   : > { %s831_s24 = smov (!%p205_p7, %s555_s24), 7 }
  0x11   : > { %s556_s25 = sshll.u32 %s831_s24, 2 }
  0x12   : > { %s208_s28 = scalar_lea.vmem %s825_s0, %s556_s25  ;;  %s799_s5 = scalar_lea.vmem %s828_s3, %s556_s25 }
  0x13   : > { %v756_v0 = vmov 0.0  }
  0x14   : > { %221 = vst [vmem:[%s829_s4] sm:$0x1] %v756_v0 }
  0x15 PF: > { %v642_v1 = vld [vmem:[#allocation2] sm:$0xff]  ;;  %vm280_vm0 = vcmask 130048   ;;  %v649_v4 = vld [vmem:[#allocation2 + $0x38] sm:$0xff]  ;;  %v648_v5 = vld [vmem:[#allocation2 + $0x30] sm:$0xff] }
  0x16   : > { %v640_v2 = vld [vmem:[%s208_s28] sm:$0xff]  ;;  %294 = vmatpush.bf16.msra.mxu0 %v642_v1  ;;  %v647_v6 = vld [vmem:[#allocation2 + $0x28] sm:$0xff]  ;;  %v645_v9 = vld [vmem:[#allocation2 + $0x18] sm:$0xff] }
  0x17   : > { %v650_v3 = vld [vmem:[#allocation2 + $0x40] sm:$0xff]  ;;  %v641_v7 = vld [vmem:[%s208_s28 + $0x8] sm:$0xff]  ;;  %v644_v10 = vld [vmem:[#allocation2 + $0x10] sm:$0xff] }
  0x18   : > { %361 = vmatpush.bf16.msra.mxu1 %v650_v3  ;;  %670 = vmatpush.bf16.msra.mxu3 %v650_v3  ;;  %v646_v8 = vld [vmem:[#allocation2 + $0x20] sm:$0xff]  ;;  %v643_v11 = vld [vmem:[#allocation2 + $0x8] sm:$0xff]  ;;  %v657_v14 = vld [vmem:[#allocation2 + $0x78] sm:$0xff] }
  0x19   : > { %572 = vmatmul.msk.bf16.vlgmr.msra.gmra.mxu0 %vm280_vm0, %v640_v2  ;;  %v658_v12 = vld [vmem:[#allocation2 + $0x80] sm:$0xff]  ;;  %v656_v16 = vld [vmem:[#allocation2 + $0x70] sm:$0xff]  ;;  %v655_v20 = vld [vmem:[#allocation2 + $0x68] sm:$0xff] }
  0x1a   : > { %435 = vmatpush.bf16.msrb.mxu0 %v658_v12  ;;  %678 = vmatpush.bf16.msra.mxu2 %v658_v12  ;;  %v708_v15 = vld [vmem:[%s827_s2] ss:$0 sm:$0xff]  ;;  %v653_v32 = vld [vmem:[#allocation2 + $0x58] sm:$0xff]  ;;  %v652_v33 = vld [vmem:[#allocation2 + $0x50] sm:$0xff] }
  0x1b   : > { %v654_v31 = vld [vmem:[#allocation2 + $0x60] sm:$0xff]  ;;  %v651_v34 = vld [vmem:[#allocation2 + $0x48] sm:$0xff] }
  0x1c   : > { %362 = vmatpush.bf16.msra.mxu1 %v649_v4  ;;  %671 = vmatpush.bf16.msra.mxu3 %v649_v4  ;;  %v709_v36 = vld [vmem:[%s827_s2 + $0x1] ss:$0 sm:$0xff]  ;;  %v710_v51 = vld [vmem:[%s827_s2 + $0x2] ss:$0 sm:$0xff] }
  0x1e   : > { %436 = vmatpush.bf16.msrb.mxu0 %v657_v14  ;;  %679 = vmatpush.bf16.msra.mxu2 %v657_v14 }
  0x20   : > { %363 = vmatpush.bf16.msra.mxu1 %v648_v5  ;;  %672 = vmatpush.bf16.msra.mxu3 %v648_v5  ;;  %v462_v5 = vld [vmem:[%s829_s4] sm:$0x1] }
  0x22   : > { %437 = vmatpush.bf16.msrb.mxu0 %v656_v16  ;;  %680 = vmatpush.bf16.msra.mxu2 %v656_v16 }
  0x24   : > { %364 = vmatpush.bf16.msra.mxu1 %v647_v6  ;;  %673 = vmatpush.bf16.msra.mxu3 %v647_v6 }
  0x26   : > { %438 = vmatpush.bf16.msrb.mxu0 %v655_v20  ;;  %681 = vmatpush.bf16.msra.mxu2 %v655_v20 }
  0x28   : > { %365 = vmatpush.bf16.msra.mxu1 %v646_v8  ;;  %674 = vmatpush.bf16.msra.mxu3 %v646_v8 }
  0x29   : > { %573 = vmatmul.msk.bf16.gmra.mxu0 %vm280_vm0, %v641_v7 }
  0x2a   : > { %439 = vmatpush.bf16.msrb.mxu0 %v654_v31  ;;  %682 = vmatpush.bf16.msra.mxu2 %v654_v31 }
  0x2c   : > { %366 = vmatpush.bf16.msra.mxu1 %v645_v9  ;;  %675 = vmatpush.bf16.msra.mxu3 %v645_v9 }
  0x2e   : > { %440 = vmatpush.bf16.msrb.mxu0 %v653_v32  ;;  %683 = vmatpush.bf16.msra.mxu2 %v653_v32 }
  0x30   : > { %367 = vmatpush.bf16.msra.mxu1 %v644_v10  ;;  %676 = vmatpush.bf16.msra.mxu3 %v644_v10 }
  0x32   : > { %441 = vmatpush.bf16.msrb.mxu0 %v652_v33  ;;  %684 = vmatpush.bf16.msra.mxu2 %v652_v33 }
  0x34   : > { %368 = vmatpush.bf16.msra.mxu1 %v643_v11  ;;  %677 = vmatpush.bf16.msra.mxu3 %v643_v11 }
  0x36   : > { %442 = vmatpush.bf16.msrb.mxu0 %v651_v34  ;;  %685 = vmatpush.bf16.msra.mxu2 %v651_v34 }
  0x96   : > { %v296_v13 = vpop.f32.mrf.mxu0 }
  0x97   : > { %v297_v17 = vadd.f32 %v708_v15, %v296_v13 }
  0x99   : > { %v306_v21 = vmax.f32 %v297_v17, 0.0 }
  0x9e   : > { %v298_v18 = vpop.f32.mrf.mxu0 }
  0x9f   : > { %v299_v19 = vadd.f32 %v708_v15, %v298_v18 }
  0xa1   : > { %v307_v22 = vmax.f32 %v299_v19, 0.0 }
  0xa3   : > { %v310_v23 = vpack.c.bf16 %v307_v22, %v306_v21 }
  0xa5   : > { %369 = vmatmul.bf16.vlgmr.msra.gmra.mxu1 %v310_v23 }
  0xa6   : > { %v301_v24 = vpop.f32.mrf.mxu0 }
  0xa7   : > { %v302_v25 = vadd.f32 %v708_v15, %v301_v24 }
  0xa9   : > { %v308_v28 = vmax.f32 %v302_v25, 0.0 }
  0xae   : > { %v303_v26 = vpop.f32.mrf.mxu0 }
  0xaf   : > { %v304_v27 = vadd.f32 %v708_v15, %v303_v26 }
  0xb1   : > { %v309_v29 = vmax.f32 %v304_v27, 0.0 }
  0xb3   : > { %v311_v30 = vpack.c.bf16 %v309_v29, %v308_v28 }
  0xb5   : > { %374 = vmatmul.bf16.vlgmr.msra.gmra.mxu3 %v311_v30 }
 0x122   : > { %v370_v35 = vpop.f32.mrf.mxu1 }
 0x123   : > { %v371_v37 = vadd.f32 %v709_v36, %v370_v35 }
 0x125   : > { %v380_v40 = vmax.f32 %v371_v37, 0.0 }
 0x12a   : > { %v372_v38 = vpop.f32.mrf.mxu1 }
 0x12b   : > { %v373_v39 = vadd.f32 %v709_v36, %v372_v38 }
 0x12d   : > { %v381_v41 = vmax.f32 %v373_v39, 0.0 }
 0x12f   : > { %v384_v42 = vpack.c.bf16 %v381_v41, %v380_v40 }
 0x131   : > { %443 = vmatmul.bf16.vlgmr.msrb.gmra.mxu0 %v384_v42 }
 0x138   : > { %v375_v43 = vpop.f32.mrf.mxu3 }
 0x139   : > { %v376_v44 = vadd.f32 %v709_v36, %v375_v43 }
 0x13b   : > { %v382_v47 = vmax.f32 %v376_v44, 0.0 }
 0x140   : > { %v377_v45 = vpop.f32.mrf.mxu3 }
 0x141   : > { %v378_v46 = vadd.f32 %v709_v36, %v377_v45 }
 0x143   : > { %v383_v48 = vmax.f32 %v378_v46, 0.0 }
 0x145   : > { %v385_v49 = vpack.c.bf16 %v383_v48, %v382_v47 }
 0x147   : > { %448 = vmatmul.bf16.vlgmr.msra.gmra.mxu2 %v385_v49 }
 0x1ae   : > { %v444_v50 = vpop.f32.mrf.mxu0 }
 0x1af   : > { %v445_v53 = vadd.f32 %v710_v51, %v444_v50 }
 0x1b6   : > { %v446_v52 = vpop.f32.mrf.mxu0 }
 0x1b7   : > { %v447_v54 = vadd.f32 %v710_v51, %v446_v52 }
 0x1b9   : > { %v662_v55 = vpack.c.bf16 %v447_v54, %v445_v53  ;;  %v463_v58 = vadd.f32 %v447_v54, %v445_v53 }
 0x1bb   : > { %663 = vst [vmem:[%s799_s5] sm:$0xff] %v662_v55  }
 0x1ca   : > { %v449_v56 = vpop.f32.mrf.mxu2 }
 0x1cb   : > { %v450_v57 = vadd.f32 %v710_v51, %v449_v56 }
 0x1cd   : > { %v464_v60 = vadd.f32 %v463_v58, %v450_v57 }
 0x1d2   : > { %v451_v59 = vpop.f32.mrf.mxu2 }
 0x1d3   : > { %v452_v61 = vadd.f32 %v710_v51, %v451_v59 }
 0x1d5   : > { %v667_v62 = vpack.c.bf16 %v452_v61, %v450_v57  ;;  %v465_v63 = vadd.f32 %v464_v60, %v452_v61 }
 0x1d7   : > { %669 = vst [vmem:[%s799_s5 + $0x8] sm:$0xff] %v667_v62   ;;  %v466_v0 = vrot.slane %v465_v63, 4 }
 0x1d9   : > { %v467_v1 = vadd.f32 %v466_v0, %v465_v63 }
 0x1db   : > { %v468_v2 = vrot.slane %v467_v1, 2 }
 0x1dd   : > { %v469_v3 = vadd.f32 %v468_v2, %v467_v1 }
 0x1df   : > { %v470_v4 = vrot.slane %v469_v3, 1 }
 0x1e1   : > { %v471_v6 = vadd.f32 %v470_v4, %v469_v3 }
 0x1e3   : > { %v472_v7 = vadd.f32 %v471_v6, %v462_v5 }
 0x1e5   : > { %473 = vst [vmem:[%s829_s4] sm:$0x1] %v472_v7 }
 0x1e6 PF: > { %s16_s15 = sadd.s32 1, %s751_s15  }
 0x1e7   : > { %p13_p8 = scmp.ge.s32.totalorder %s16_s15, 4  }
 0x1e9   :  { %15 = sbr.rel (!%p13_p8) target bundleno = 1 (0x1), region = 79 }
 0x1ee   :  { %502 = vsyncpa [#allocation3], 1 }
 0x1ef   :  { %504 = vsyncpa [#allocation3 + $0x1], 1 }

</bundles_post_ra>
